<compile_context>
chip_gen: v7x
topology: tpu7x:2x2x1
jax: 0.10.0
libtpu: 0.0.40
codegen_flags: <defaults>
</compile_context>

<pallas_src>
import functools
import math

import jax
import jax.numpy as jnp
from jax.experimental import pallas as pl
from jax.experimental.pallas import tpu as pltpu


def _round_up(x, m):
    return (x + m - 1) // m * m


def _vmem_capacity_bytes():
    """Trace-time VMEM capacity query; conservative fallback (v7x-class)."""
    try:
        info = pltpu.get_tpu_info()
        cap = getattr(info, "vmem_capacity_bytes", None)
        if cap:
            return int(cap)
    except Exception:
        pass
    return 64 << 20


def _lora_fa_kernel(*refs, has_bias, has_residual, compute_dtype):
    # refs: x, A, B, [bias], [residual], out, xa_scratch
    idx = 0
    x_ref = refs[idx]; idx += 1
    a_ref = refs[idx]; idx += 1
    b_ref = refs[idx]; idx += 1
    bias_ref = None
    res_ref = None
    if has_bias:
        bias_ref = refs[idx]; idx += 1
    if has_residual:
        res_ref = refs[idx]; idx += 1
    o_ref = refs[idx]; idx += 1
    xa_ref = refs[idx]

    # x @ A does not depend on the N axis: compute once per M tile and keep the
    # tiny (TM, r) intermediate resident in VMEM scratch for all N tiles.
    # (Only correct because j is the innermost, sequential 'arbitrary' axis.)
    @pl.when(pl.program_id(1) == 0)
    def _():
        x = x_ref[...].astype(compute_dtype)          # per-tile cast, no HBM pass
        xa = jnp.dot(x, a_ref[...], preferred_element_type=jnp.float32)
        xa_ref[...] = xa.astype(xa_ref.dtype)

    out = jnp.dot(xa_ref[...], b_ref[...], preferred_element_type=jnp.float32)
    if bias_ref is not None:
        out = out + bias_ref[...]                      # f32 bias add
    if res_ref is not None:
        out = out + res_ref[...].astype(jnp.float32)   # fused base + delta
    o_ref[...] = out.astype(o_ref.dtype)


def prepare_lora_params(lora_A_w, lora_B_w, bias=None, *, lora_alpha=32.0,
                        scale=None, compute_dtype=jnp.bfloat16):
    """One-time weight preparation (call once, NOT per forward).

    lora_A_w : [r, in_features]   (torch nn.Linear(in, r).weight layout)
    lora_B_w : [out_features, r]  (torch nn.Linear(r, out).weight layout)
    bias     : [out_features] or None
    scale    : optional override (e.g. tanh(scaling) for trainable_scaling=True);
               defaults to lora_alpha / r.

    Transposes to row-major matmul layout A:[in,r], B:[r,out], folds the LoRA
    scale into B in f32, then casts both to the MXU compute dtype.
    """
    r, in_features = lora_A_w.shape
    out_features = lora_B_w.shape[0]
    if scale is None:
        scale = float(lora_alpha) / float(r) if r > 0 else 0.0

    a_t = jnp.asarray(lora_A_w, jnp.float32).T.astype(compute_dtype)      # [in, r]
    b_t = (jnp.asarray(lora_B_w, jnp.float32).T * scale).astype(compute_dtype)  # [r, out]

    bias2d = None
    if bias is not None:
        bias2d = jnp.asarray(bias, jnp.float32).reshape(1, out_features)
    return a_t, b_t, bias2d, out_features


def lora_fa_linear(x, a_t, b_t, bias2d=None, out_features=None, *,
                   residual=None, out_dtype=None,
                   compute_dtype=jnp.bfloat16, tm=None, tn=None):
    """Forward: x [..., in_features] -> [..., out_features].

    residual : optional [..., out_features] tensor fused-added to the result
               (typical LoRA use: frozen base-linear output + delta).
    out_dtype: output dtype (default x.dtype); pass jnp.bfloat16 to halve the
               output HBM stream when the consumer tolerates it.
    """
    in_features, r = a_t.shape
    if out_features is None:
        out_features = b_t.shape[1]
    n_out = out_features
    if out_dtype is None:
        out_dtype = x.dtype

    lead_shape = x.shape[:-1]
    M = math.prod(lead_shape) if lead_shape else 1

    if r == 0:
        # LoRA path contributes nothing; forward is just bias (+ residual).
        out = jnp.zeros((*lead_shape, out_features), out_dtype)
        if bias2d is not None:
            out = out + bias2d[0].astype(out_dtype)
        if residual is not None:
            out = out + residual.astype(out_dtype)
        return out

    x2d = x.reshape(M, in_features)                       # native dtype, no cast
    res2d = residual.reshape(M, n_out) if residual is not None else None

    x_isz = jnp.dtype(x.dtype).itemsize
    out_isz = jnp.dtype(out_dtype).itemsize
    c_isz = jnp.dtype(compute_dtype).itemsize
    res_isz = jnp.dtype(res2d.dtype).itemsize if res2d is not None else 0

    # -------- generation-aware tile / VMEM-budget selection --------
    vmem_cap = _vmem_capacity_bytes()
    small_vmem = vmem_cap <= (64 << 20)          # v7x-class: 64 MiB VMEM, 2 TCs
    budget = (48 << 20) if small_vmem else (96 << 20)

    tm_cap = _round_up(tm if tm is not None else (512 if small_vmem else 1024), 8)
    tn_cap = _round_up(tn if tn is not None else (4096 if small_vmem else 2048), 128)

    # N tile: prefer a single tile (no per-i B refetch, j>0 path never taken).
    TN = n_out if n_out <= tn_cap else tn_cap

    # M tile: full M when it fits; on 2-TC parts split M so the 'parallel' axis
    # has >= 2 blocks and both TensorCores get work (decode / small-batch).
    if M <= tm_cap:
        if small_vmem and M >= 16:
            TM = _round_up(pl.cdiv(M, 2), 8)
        else:
            TM = M
    else:
        TM = tm_cap

    def vmem_fp(tm_, tn_):
        fp = 2 * tm_ * in_features * x_isz        # x tile, double buffered
        fp += 2 * tm_ * tn_ * out_isz             # out tile
        fp += 2 * r * tn_ * c_isz                 # B tile
        fp += 2 * in_features * r * c_isz         # A (resident, 2 bufs)
        fp += tm_ * r * c_isz                     # xa scratch
        if bias2d is not None:
            fp += 2 * tn_ * 4
        if res2d is not None:
            fp += 2 * tm_ * tn_ * res_isz
        return fp

    # Shrink tiles (keeping them Pallas-legal) until the footprint fits.
    while vmem_fp(TM, TN) > budget and TM > 256:
        TM = max(256, _round_up(pl.cdiv(TM, 2), 8))
    while vmem_fp(TM, TN) > budget and TN > 512:
        TN = max(512, _round_up(pl.cdiv(TN, 2), 128))

    grid = (pl.cdiv(M, TM), pl.cdiv(n_out, TN))

    has_bias = bias2d is not None
    has_residual = res2d is not None
    kernel = functools.partial(_lora_fa_kernel, has_bias=has_bias,
                               has_residual=has_residual,
                               compute_dtype=compute_dtype)

    in_specs = [
        pl.BlockSpec((TM, in_features), lambda i, j: (i, 0)),    # x M-tile
        pl.BlockSpec((in_features, r), lambda i, j: (0, 0)),     # A (resident)
        pl.BlockSpec((r, TN), lambda i, j: (0, j)),              # B N-tile
    ]
    inputs = [x2d, a_t, b_t]
    if has_bias:
        in_specs.append(pl.BlockSpec((1, TN), lambda i, j: (0, j)))
        inputs.append(bias2d)
    if has_residual:
        in_specs.append(pl.BlockSpec((TM, TN), lambda i, j: (i, j)))
        inputs.append(res2d)

    flops = 2 * M * in_features * r + 2 * M * r * n_out
    bytes_accessed = (
        M * in_features * x_isz
        + in_features * r * c_isz
        + r * n_out * c_isz
        + (n_out * 4 if has_bias else 0)
        + (M * n_out * res_isz if has_residual else 0)
        + M * n_out * out_isz
    )

    out2d = pl.pallas_call(
        kernel,
        out_shape=jax.ShapeDtypeStruct((M, n_out), out_dtype),
        grid=grid,
        in_specs=in_specs,
        out_specs=pl.BlockSpec((TM, TN), lambda i, j: (i, j)),
        scratch_shapes=[pltpu.VMEM((TM, r), compute_dtype)],
        compiler_params=pltpu.CompilerParams(
            dimension_semantics=("parallel", "arbitrary"),
            vmem_limit_bytes=budget,
        ),
        cost_estimate=pl.CostEstimate(
            flops=flops, transcendentals=0, bytes_accessed=bytes_accessed),
    )(*inputs)

    return out2d.reshape(*lead_shape, out_features)


def init_params(key, in_features, out_features, r, dtype=jnp.float32):
    """Deterministic init mirroring the PyTorch module's __init__ shapes/dists."""
    k_a, k_b, k_bias = jax.random.split(key, 3)
    # kaiming_uniform_(a=sqrt(5)) on weight [fan_out, fan_in]: bound = 1/sqrt(fan_in)
    bound_a = 1.0 / math.sqrt(in_features)
    lora_A_w = jax.random.uniform(k_a, (r, in_features), dtype,
                                  minval=-bound_a, maxval=bound_a)
    bound_b = 1.0 / math.sqrt(r)
    lora_B_w = jax.random.uniform(k_b, (out_features, r), dtype,
                                  minval=-bound_b, maxval=bound_b)
    bound_bias = 1.0 / math.sqrt(out_features)
    bias = jax.random.uniform(k_bias, (out_features,), dtype,
                              minval=-bound_bias, maxval=bound_bias)
    return lora_A_w, lora_B_w, bias


if __name__ == "__main__":
    key = jax.random.PRNGKey(0)
    batch, seq = 2, 8
    in_features, out_features, r = 32, 64, 8
    lora_alpha = 32.0

    k_x, k_p, k_res = jax.random.split(key, 3)
    x = jax.random.normal(k_x, (batch, seq, in_features), dtype=jnp.float32)
    lora_A_w, lora_B_w, bias = init_params(k_p, in_features, out_features, r)

    # One-time weight prep (transpose + scale fold + bf16 cast), then forward.
    a_t, b_t, bias2d, out_f = prepare_lora_params(
        lora_A_w, lora_B_w, bias, lora_alpha=lora_alpha)

    # Pure-JAX f32 reference of the module semantics (dropout p=0 -> identity).
    ref = (x @ lora_A_w.T) @ lora_B_w.T * (lora_alpha / r) + bias

    # 1) default path: bias, output in x.dtype.
    out = jax.block_until_ready(lora_fa_linear(x, a_t, b_t, bias2d, out_f))
    assert out.shape == (batch, seq, out_features)
    assert out.dtype == x.dtype
    assert jnp.allclose(out, ref, atol=5e-2, rtol=5e-2)

    # 2) bias=False variant.
    out_nb = jax.block_until_ready(lora_fa_linear(x, a_t, b_t, None, out_f))
    assert jnp.allclose(out_nb, ref - bias, atol=5e-2, rtol=5e-2)

    # 3) fused base+delta residual add with bf16 output.
    base = jax.random.normal(k_res, (batch, seq, out_features), jnp.float32)
    out_res = jax.block_until_ready(
        lora_fa_linear(x, a_t, b_t, bias2d, out_f,
                       residual=base, out_dtype=jnp.bfloat16))
    assert out_res.dtype == jnp.bfloat16
    assert jnp.allclose(out_res.astype(jnp.float32), ref + base,
                        atol=1.5e-1, rtol=1e-1)

    print("KERNEL_OK")
</pallas_src>

<mosaic_0001>
module attributes {stable_mosaic.version = 11 : i64} {
  func.func @_lora_fa_kernel(%arg0: i32, %arg1: i32, %arg2: memref<8x32xf32, #tpu.memory_space<vmem>>, %arg3: memref<32x8xbf16, #tpu.memory_space<vmem>>, %arg4: memref<8x64xbf16, #tpu.memory_space<vmem>>, %arg5: memref<1x64xf32, #tpu.memory_space<vmem>>, %arg6: memref<8x64xf32, #tpu.memory_space<vmem>>, %arg7: memref<8x8xbf16, #tpu.memory_space<vmem>>) attributes {dimension_semantics = [#tpu.dimension_semantics<parallel>, #tpu.dimension_semantics<arbitrary>], iteration_bounds = array<i64: 2, 1>, scalar_prefetch = 0 : i64, scratch_operands = 1 : i64, tpu.core_type = #tpu.core_type<tc>, window_params = [{transform_indices = @transform_0, window_bounds = array<i64: 8, 32>}, {pipeline_mode = #tpu.pipeline_mode<synchronous>, transform_indices = @transform_1, window_bounds = array<i64: 32, 8>}, {transform_indices = @transform_2, window_bounds = array<i64: 8, 64>}, {transform_indices = @transform_3, window_bounds = array<i64: 1, 64>}, {transform_indices = @transform_4, window_bounds = array<i64: 8, 64>}]} {
    %c0_i32 = arith.constant 0 : i32
    %0 = arith.cmpi eq, %arg1, %c0_i32 : i32
    %1 = arith.extui %0 : i1 to i32
    %c0_i32_0 = arith.constant 0 : i32
    %2 = arith.cmpi ne, %1, %c0_i32_0 : i32
    scf.if %2 {
      %c0_8 = arith.constant 0 : index
      %c0_9 = arith.constant 0 : index
      %10 = vector.load %arg2[%c0_8, %c0_9] : memref<8x32xf32, #tpu.memory_space<vmem>>, vector<8x32xf32>
      %11 = arith.truncf %10 : vector<8x32xf32> to vector<8x32xbf16>
      %c0_10 = arith.constant 0 : index
      %c0_11 = arith.constant 0 : index
      %12 = vector.load %arg3[%c0_10, %c0_11] : memref<32x8xbf16, #tpu.memory_space<vmem>>, vector<32x8xbf16>
      %cst_12 = arith.constant dense<0.000000e+00> : vector<8x8xf32>
      %13 = tpu.matmul %11, %12, %cst_12 {dimension_numbers = #tpu.dot_dimension_numbers<[1], [0], [0], [1], [0, 0, 1, 1], [], []>} : vector<8x32xbf16>, vector<32x8xbf16>, vector<8x8xf32> -> vector<8x8xf32>
      %14 = arith.truncf %13 : vector<8x8xf32> to vector<8x8xbf16>
      %c0_13 = arith.constant 0 : index
      %c0_14 = arith.constant 0 : index
      %15 = vector.load %arg7[%c0_13, %c0_14] : memref<8x8xbf16, #tpu.memory_space<vmem>>, vector<8x8xbf16>
      tpu.vector_store %arg7[%c0_13, %c0_14], %14 {strides = array<i32>} : memref<8x8xbf16, #tpu.memory_space<vmem>>, vector<8x8xbf16>,
    } else {
    }
    %c0 = arith.constant 0 : index
    %c0_1 = arith.constant 0 : index
    %3 = vector.load %arg7[%c0, %c0_1] : memref<8x8xbf16, #tpu.memory_space<vmem>>, vector<8x8xbf16>
    %c0_2 = arith.constant 0 : index
    %c0_3 = arith.constant 0 : index
    %4 = vector.load %arg4[%c0_2, %c0_3] : memref<8x64xbf16, #tpu.memory_space<vmem>>, vector<8x64xbf16>
    %cst = arith.constant dense<0.000000e+00> : vector<8x64xf32>
    %5 = tpu.matmul %3, %4, %cst {dimension_numbers = #tpu.dot_dimension_numbers<[1], [0], [0], [1], [0, 0, 1, 1], [], []>} : vector<8x8xbf16>, vector<8x64xbf16>, vector<8x64xf32> -> vector<8x64xf32>
    %c0_4 = arith.constant 0 : index
    %c0_5 = arith.constant 0 : index
    %6 = vector.load %arg5[%c0_4, %c0_5] : memref<1x64xf32, #tpu.memory_space<vmem>>, vector<1x64xf32>
    %7 = vector.broadcast %6 : vector<1x64xf32> to vector<8x64xf32>
    %8 = arith.addf %5, %7 : vector<8x64xf32>
    %c0_6 = arith.constant 0 : index
    %c0_7 = arith.constant 0 : index
    %9 = vector.load %arg6[%c0_6, %c0_7] : memref<8x64xf32, #tpu.memory_space<vmem>>, vector<8x64xf32>
    tpu.vector_store %arg6[%c0_6, %c0_7], %8 {strides = array<i32>} : memref<8x64xf32, #tpu.memory_space<vmem>>, vector<8x64xf32>,
    return
  }
  func.func @transform_0(%arg0: i32, %arg1: i32) -> (i32, i32) {
    %c0_i32 = arith.constant 0 : i32
    %c0_i32_0 = arith.constant 0 : i32
    return %arg0, %c0_i32 : i32, i32
  }
  func.func @transform_1(%arg0: i32, %arg1: i32) -> (i32, i32) {
    %c0_i32 = arith.constant 0 : i32
    %c0_i32_0 = arith.constant 0 : i32
    %c0_i32_1 = arith.constant 0 : i32
    return %c0_i32, %c0_i32_0 : i32, i32
  }
  func.func @transform_2(%arg0: i32, %arg1: i32) -> (i32, i32) {
    %c0_i32 = arith.constant 0 : i32
    %c0_i32_0 = arith.constant 0 : i32
    return %c0_i32, %arg1 : i32, i32
  }
  func.func @transform_3(%arg0: i32, %arg1: i32) -> (i32, i32) {
    %c0_i32 = arith.constant 0 : i32
    %c0_i32_0 = arith.constant 0 : i32
    return %c0_i32, %arg1 : i32, i32
  }
  func.func @transform_4(%arg0: i32, %arg1: i32) -> (i32, i32) {
    %c0_i32 = arith.constant 0 : i32
    return %arg0, %arg1 : i32, i32
  }
}

</mosaic_0001>

<bundles_post_ra>
// kernel: tpu_custom_call.1
= control target key start
LH: loop header
LB: loop body
LE: loop exit
PB: predicated region body
PF: predicated region fallthrough
CT: control target
= control target key end

     0   :  { %9 = vsyncpa [#allocation4], 0  ;;  %s805_s0 = inlined_call_operand.vmem [shape: f32[16,32], index: 0, kind: input, shape index: {}]   ;;  %s806_s1 = inlined_call_operand.vmem [shape: bf16[32,8], index: 1, kind: input, shape index: {}]   ;;  %s807_s2 = inlined_call_operand.vmem [shape: bf16[8,64], index: 2, kind: input, shape index: {}]   ;;  %s808_s3 = inlined_call_operand.vmem [shape: f32[1,64], index: 3, kind: input, shape index: {}]   ;;  %s809_s4 = inlined_call_operand.hbm [shape: f32[16,64], index: 4, kind: output, shape index: {}]  }
   0x1   :  { %11 = vsyncpa [#allocation4 + $0x1], 0  ;;  %s681_s15 = smov 0   ;;  %s683_s16 = smov 0  }
   0x2   :  { %s685_s17 = smov 0   ;;  %s687_s18 = smov 0  }
   0x3   :  { %s689_s19 = smov 0   ;;  %s691_s20 = smov 0  }
   0x4 LB: > { %s477_s21 = sadd.s32 4294967295, %s651_s20   ;;  %s478_s22 = sadd.s32 4294967294, %s651_s20   ;;  %s651_s20 = sphi %s691_s20, %s17_s20   ;;  %s647_s19 = sphi %s689_s19, %s816_s19   ;;  %s643_s18 = sphi %s687_s18, %s815_s18   ;;  %s639_s17 = sphi %s685_s17, %s814_s17   ;;  %s635_s16 = sphi %s683_s16, %s813_s16   ;;  %s631_s15 = sphi %s681_s15, %s812_s15  }
   0x5   : > { %s29_s23 = sadd.s32 1, %s647_s19  ;;  %s137_s24 = sadd.s32 1, %s639_s17 }
   0x6   : > { %p31_p0 = scmp.ge.s32.totalorder %s29_s23, 2  ;;  %p147_p1 = scmp.ne.s32.totalorder %s639_s17, %s635_s16 }
   0x7   : > { %p148_p2 = scmp.eq.s32.totalorder %s477_s21, 1  ;;  %p153_p3 = scmp.ne.s32.totalorder %s635_s16, %s631_s15 }
   0x8   : > { %s818_s23 = smov (%p31_p0, %s29_s23), 0  ;;  %p154_p5 = scmp.eq.s32.totalorder %s478_s22, 1 }
   0x9   : > { %p721_p4 = por %p148_p2, %p147_p1  ;;  %s132_s26 = ssub.s32 %s647_s19, %s818_s23 }
   0xa   : > { %p483_p6 = scmp.ge.s32.totalorder %s651_s20, 1  ;;  %p135_p7 = scmp.eq.s32.totalorder %s132_s26, 0 }
   0xb   : > { %p728_p8 = por %p154_p5, %p153_p3  ;;  %p195_p9 = scmp.lt.s32.totalorder %s651_s20, 3 }
   0xc   : > { %s734_s28 = scalar_select %p135_p7, %s639_s17, %s137_s24  }
   0xd   : > { %p196_p10 = pnand %p483_p6, %p195_p9 }
   0xe   : > { %v571_v0 = vld [vmem:[%s806_s1] sm:$0xff] (!%p196_p10)   ;;  %v653_v1 = vmov (!%p196_p10), 0.0   ;;  %v572_v2 = vld [vmem:[%s806_s1 + $0x8] sm:$0xff] (!%p196_p10)   ;;  %vm654_vm0 = vmmov (!%p196_p10), 0   ;;  %p227_p11 = scmp.lt.s32.totalorder (!%p196_p10), %s643_s18, 1  ;;  %vm261_vm1 = vcmask (!%p196_p10), 261120  }
   0xf   : > { %199 = sbr.rel (%p196_p10) target bundleno = 479 (0x1df), region = 36  ;;  %500 = vmatprep.subr.bf16.mxu0 (!%p196_p10), %v653_v1  ;;  %508 = vmatprep.subr.bf16.mxu1 (!%p196_p10), %v653_v1  ;;  %v309_v5 = vld [vmem:[%s807_s2] sm:$0xf] (!%p196_p10)  ;;  %vm321_vm2 = vcmask (!%p196_p10), 1043456   ;;  %vm306_vm3 = vcmask (!%p196_p10), 60416   ;;  %vm317_vm4 = vcmask (!%p196_p10), 64512  }
  0x10   : > { %501 = vmatpush3.bf16.msra.mxu0 (!%p196_p10), %v571_v0  ;;  %504 = vmatprep.mubr.msk.bf16.mxu0 (!%p196_p10), %vm654_vm0, %v653_v1  ;;  %v323_v6 = vsel (!%p196_p10), %vm321_vm2, %v309_v5, 0  ;;  %s224_s14 = sand.u32 (!%p196_p10), 1, %s635_s16   ;;  %v489_v13 = vld [vmem:[%s808_s3] ss:$0 sm:$0xff] (!%p196_p10)  ;;  %s492_s26 = sshll.u32 (!%p196_p10), %s643_s18, 7  ;;  %vm365_vm5 = vcmask (!%p196_p10), 523264  }
  0x11   : > { %502 = vmatprep.subr.bf16.mxu0 (!%p196_p10), %v653_v1  ;;  %510 = vmatprep.mubr.msk.bf16.mxu1 (!%p196_p10), %vm654_vm0, %v653_v1  ;;  %s484_s21 = sshll.u32 (!%p196_p10), %s224_s14, 3  ;;  %s655_s9 = smov (!%p196_p10), [#allocation3]  }
  0x12   : > { %509 = vmatpush3.bf16.msra.mxu1 (!%p196_p10), %v323_v6  ;;  %s226_s29 = scalar_lea.vmem (!%p196_p10), [#allocation3], %s484_s21  ;;  %s577_s10 = sshll.u32 (!%p196_p10), %s655_s9, 4  ;;  %s578_s10 = int_to_ptr.vmem [resolvable:$false] %s577_s10 }
  0x13   : > { %s382_s30 = sshll.u32 (!%p196_p10), %s226_s29, 4  ;;  %s760_s30 = int_to_ptr.vmem [resolvable:$true] %s382_s30 }
  0x14   : > { %503 = vmatpush3.bf16.msra.mxu0 (!%p196_p10), %v572_v2  ;;  %p580_p1 = scmp.lt.s32.totalorder (!%p196_p10), %s760_s30, %s578_s10 }
  0x16   : > { %s228_s7 = scalar_select %p227_p11, %s643_s18, 1 }
  0x17   : > { %s368_s18 = scalar_lea.sflag [#allocation4], %s224_s14 }
  0x18   : > { %s485_s8 = sshll.u32 %s228_s7, 3  ;;  %s758_s7 = scalar_lea.hbm %s809_s4, %s492_s26 }
  0x19   : > { %s230_s11 = scalar_lea.vmem %s805_s0, %s485_s8  ;;  %s573_s8 = scalar_lea.vmem %s760_s30, 128 }
  0x1a   : > { %v243_v3 = vld [vmem:[%s230_s11] sm:$0xff]  ;;  %p574_p12 = scmp.ne.s32.totalorder %s760_s30, %s573_s8  ;;  %s579_s11 = scalar_lea.vmem %s578_s10, 256 }
  0x1b   : > { %v244_v4 = vpack.c.bf16 %v243_v3, %v243_v3  ;;  %p581_p2 = scmp.lt.s32.totalorder %s579_s11, %s573_s8 }
  0x1c   : > { %p575_p13 = pnand %p574_p12, %p721_p4 }
  0x1d   : > { %505 = vmatmul.mubr.msk.bf16.vlgmr.msra.gmra.mrb[0].mxu0 %vm261_vm1, %v244_v4  ;;  %p582_p3 = por %p581_p2, %p580_p1 }
  0x1e   : > { %p576_p0 = pneg %p575_p13 }
  0x20   : > { %p583_p5 = pnand %p582_p3, %p576_p0 }
  0xf0   : > { %v299_v7 = vpop.f32.mrb[0].mxu0 }
  0xf1   : > { %v305_v8 = vpack.c.bf16 %v299_v7, %v299_v7  ;;  %v506_v9 = vpop.f32.mrb[1].mxu0 }
  0xf2   : > { %v302_v10 = vpop.f32.mrb[2].mxu0 }
  0xf3   : > { %307 = vst.msk [vmem:[#allocation2] sm:$0xf] %vm306_vm3, %v305_v8  ;;  %v507_v11 = vpop.f32.mrb[3].mxu0 }
  0xfa   : > { %v308_v12 = vld [vmem:[#allocation2] sm:$0xf] }
  0xfb   : > { %511 = vmatmul.mubr.msk.bf16.vlgmr.msra.gmra.mrb[0].mxu1 %vm317_vm4, %v308_v12 }
 0x1ce   : > { %v359_v14 = vpop.f32.mrb[0].mxu1 }
 0x1cf   : > { %v360_v15 = vadd.f32 %v489_v13, %v359_v14  ;;  %v512_v16 = vpop.f32.mrb[1].mxu1 }
 0x1d0   : > { %v362_v17 = vpop.f32.mrb[2].mxu1 }
 0x1d1   : > { %v513_v18 = vpop.f32.mrb[3].mxu1  ;;  %366 = vst.msk [vmem:[%s226_s29] sm:$0xff] %vm365_vm5, %v360_v15 }
 0x1d2   : > { %586 = shalt.err (!%p583_p5)
}
 0x1d3   : > { %s587_s12 = scalar_lea.hbm %s758_s7, 128  ;;  %s591_s21 = scalar_lea.hbm %s809_s4, 256 }
 0x1d4   : > { %p588_p6 = scmp.ne.s32.totalorder %s758_s7, %s587_s12  ;;  %p592_p10 = scmp.lt.u32.totalorder %s758_s7, %s809_s4 }
 0x1d5   : > { %p593_p11 = scmp.lt.u32.totalorder %s591_s21, %s587_s12  ;;  %p595_p13 = scmp.lt.u32.totalorder %s587_s12, %s758_s7 }
 0x1d6   : > { %p589_p7 = pnand %p588_p6, %p721_p4 }
 0x1d7   : > { %p594_p12 = por %p593_p11, %p592_p10 }
 0x1d8   : > { %p590_p9 = pneg %p589_p7 }
 0x1d9   : > { %p596_p0 = por %p595_p13, %p594_p12 }
 0x1db   : > { %p597_p1 = pnand %p596_p0, %p590_p9 }
 0x1dd   : > { %600 = shalt.err (!%p597_p1)
}
 0x1de   : > { %514 = dma.vmem_to_hbm [thread:$0]  (%p721_p4), %s760_s30, 128, %s758_s7, %s368_s18  }
 0x1df PF: > { %p520_p2 = scmp.ge.s32.totalorder %s651_s20, 2  ;;  %s394_s26 = sand.u32 1, %s631_s15  }
 0x1e0   : > { %s395_s29 = scalar_lea.sflag [#allocation4], %s394_s26 }
 0x1e1   : > { %p517_p3 = pnand %p520_p2, %p728_p8 }
 0x1e3   : > { %626 = dma.done.wait (!%p517_p3), %s395_s29, 128  }
 0x1e4   : > { %628 = vsyncadd (!%p517_p3), %s395_s29, 4294967168  ;;  %s17_s20 = sadd.s32 1, %s651_s20   ;;  %s812_s15 = smov %s635_s16 }
 0x1e5   : > { %p14_p5 = scmp.ge.s32.totalorder %s17_s20, 4   ;;  %s813_s16 = smov %s639_s17 }
 0x1e6   : > { %s814_s17 = smov %s734_s28  ;;  %s815_s18 = smov %s647_s19 }
 0x1e7   : > { %s816_s19 = smov %s818_s23  ;;  %16 = sbr.rel (!%p14_p5) target bundleno = 4 (0x4), region = 81 }
 0x1ee   :  { %400 = vsyncpa [#allocation4], 1 }
 0x1ef   :  { %402 = vsyncpa [#allocation4 + $0x1], 1 }

</bundles_post_ra>
